<compile_context>
chip_gen: v7x
topology: tpu7x:2x2x1
jax: 0.10.0
libtpu: 0.0.40
codegen_flags: <defaults>
</compile_context>

<pallas_src>
import jax
import jax.numpy as jnp
from jax.experimental import pallas as pl
from jax.experimental.pallas import tpu as pltpu

_MiB = 1024 * 1024


def _round_up(x, m):
    return ((x + m - 1) // m) * m


def _choose_tile(extent, requested, align):
    """Tile (multiple of `align`, <= requested) minimising padding of `extent`.

    Returns (tile, padded_extent) with padded_extent = num_tiles * tile >= extent.
    Padding waste is bounded by ~num_tiles*align instead of up to a whole extra
    tile (avoids the old `round extent up to a tile multiple` blow-up).
    """
    extent_a = _round_up(extent, align)
    requested = max(align, min(_round_up(requested, align), extent_a))
    num_tiles = -(-extent_a // requested)
    tile = _round_up(-(-extent_a // num_tiles), align)
    return tile, num_tiles * tile


def _device_defaults():
    """Generation-tuned tile / VMEM defaults (v5e / v6e / v7x)."""
    try:
        kind = jax.devices()[0].device_kind.lower()
    except Exception:
        kind = ""
    if "v5" in kind:
        # ~240 flop/B roofline, 4x128x128 MXU, 128 MiB VMEM
        return dict(tile_n=512, tile_l=1024, tile_k=512,
                    vmem_limit=100 * _MiB, two_cores=False)
    if "v6" in kind:
        # ~700 flop/B roofline, 128 MiB VMEM
        return dict(tile_n=1024, tile_l=2048, tile_k=512,
                    vmem_limit=100 * _MiB, two_cores=False)
    if "v7" in kind:
        # 64 MiB VMEM per TensorCore, 2 TCs/chip -> keep limit <= ~48 MiB
        return dict(tile_n=1024, tile_l=2048, tile_k=512,
                    vmem_limit=48 * _MiB, two_cores=True)
    return dict(tile_n=512, tile_l=1024, tile_k=512,
                vmem_limit=64 * _MiB, two_cores=False)


# ----------------------------- kernels -----------------------------

def _mlp_kernel_resident(x_ref, w_ref, b_ref, o_ref):
    # Whole weight + bias stay VMEM-resident; x / out stream once over the row grid.
    y = jnp.dot(x_ref[...], w_ref[...], preferred_element_type=jnp.float32)
    y = y + b_ref[...].astype(jnp.float32)
    o_ref[...] = jnp.tanh(y).astype(o_ref.dtype)


def _mlp_kernel_tiled(x_ref, w_ref, b_ref, o_ref, acc_ref):
    # grid = (i: row tiles [parallel], j: latent tiles [parallel], k: hidden [arbitrary])
    k = pl.program_id(2)

    @pl.when(k == 0)
    def _init():
        acc_ref[...] = jnp.zeros_like(acc_ref)

    acc_ref[...] += jnp.dot(
        x_ref[...], w_ref[...], preferred_element_type=jnp.float32
    )

    @pl.when(k == pl.num_programs(2) - 1)
    def _finalize():
        y = acc_ref[...] + b_ref[...].astype(jnp.float32)
        o_ref[...] = jnp.tanh(y).astype(o_ref.dtype)


# ----------------------------- wrapper -----------------------------

def mlp_layer(features, weight, bias, *,
              compute_dtype=jnp.bfloat16,
              tile_n=None, tile_l=None, tile_k=None,
              resident_max_bytes=8 * _MiB,
              vmem_limit_bytes=None):
    """tanh(features @ weight + bias)  — forward of the torch MLPLayer.

    features: [N, H]; weight: [H, L]; bias: [L].
    MXU operands default to bf16 (f32 accumulation, bias add and tanh stay f32);
    pass compute_dtype=jnp.float32 for a bit-strict path.
    """
    N, H = features.shape
    H2, L = weight.shape
    assert H == H2 and bias.shape == (L,)
    out_dtype = features.dtype
    compute_dtype = jnp.dtype(compute_dtype)
    op_bytes = compute_dtype.itemsize
    out_bytes = jnp.dtype(out_dtype).itemsize

    dflt = _device_defaults()
    tile_n = dflt["tile_n"] if tile_n is None else tile_n
    tile_l = dflt["tile_l"] if tile_l is None else tile_l
    tile_k = dflt["tile_k"] if tile_k is None else tile_k
    vmem_limit = dflt["vmem_limit"] if vmem_limit_bytes is None else vmem_limit_bytes

    # Minimum alignment padding (sublane 8 on rows, lane 128 on contraction/latent).
    H_pad = _round_up(H, 128)
    L_pad0 = _round_up(L, 128)
    w_resident_bytes = H_pad * L_pad0 * op_bytes

    if w_resident_bytes <= resident_max_bytes:
        # -------- single-pass path: weight + bias VMEM-resident, grid over rows only --------
        L_pad = L_pad0
        budget = int(0.6 * vmem_limit)
        tn = max(8, min(_round_up(tile_n, 8), _round_up(N, 8)))
        while tn > 8:
            need = (2 * tn * H_pad * op_bytes + 2 * tn * L_pad * out_bytes
                    + 2 * w_resident_bytes + 2 * L_pad * 4)
            if need <= budget:
                break
            tn = _round_up(tn // 2, 8)
        tile_n, N_pad = _choose_tile(N, tn, 8)
        if dflt["two_cores"] and N_pad // tile_n < 2 and N_pad >= 16:
            # keep both v7x TensorCores busy
            tile_n, N_pad = _choose_tile(N_pad, N_pad // 2, 8)

        grid = (N_pad // tile_n,)

        x_p = features
        if (N_pad, H_pad) != (N, H):
            x_p = jnp.pad(x_p, ((0, N_pad - N), (0, H_pad - H)))
        if x_p.dtype != compute_dtype:
            x_p = x_p.astype(compute_dtype)
        w_p = weight
        if (H_pad, L_pad) != (H, L):
            w_p = jnp.pad(w_p, ((0, H_pad - H), (0, L_pad - L)))
        if w_p.dtype != compute_dtype:
            w_p = w_p.astype(compute_dtype)
        b_p = jnp.pad(bias, (0, L_pad - L)).reshape(1, L_pad).astype(jnp.float32)

        cost = pl.CostEstimate(
            flops=2 * N_pad * H_pad * L_pad,
            transcendentals=N_pad * L_pad,
            bytes_accessed=int(x_p.size) * op_bytes + int(w_p.size) * op_bytes
                           + int(b_p.size) * 4 + N_pad * L_pad * out_bytes,
        )

        out_p = pl.pallas_call(
            _mlp_kernel_resident,
            out_shape=jax.ShapeDtypeStruct((N_pad, L_pad), out_dtype),
            grid_spec=pltpu.PrefetchScalarGridSpec(
                num_scalar_prefetch=0,
                grid=grid,
                in_specs=[
                    pl.BlockSpec((tile_n, H_pad), lambda i: (i, 0)),  # x row tile
                    pl.BlockSpec((H_pad, L_pad), lambda i: (0, 0)),   # resident weight
                    pl.BlockSpec((1, L_pad), lambda i: (0, 0)),       # resident bias
                ],
                out_specs=pl.BlockSpec((tile_n, L_pad), lambda i: (i, 0)),
            ),
            compiler_params=pltpu.CompilerParams(
                dimension_semantics=("parallel",),
                vmem_limit_bytes=vmem_limit,
            ),
            cost_estimate=cost,
        )(x_p, w_p, b_p)

    else:
        # -------- general tiled path: K-innermost reduction grid + f32 accumulator --------
        tile_n, N_pad = _choose_tile(N, tile_n, 8)
        tile_l, L_pad = _choose_tile(L, tile_l, 128)
        tile_k, H_pad = _choose_tile(H, tile_k, 128)
        if (dflt["two_cores"] and (N_pad // tile_n) * (L_pad // tile_l) < 2
                and N_pad >= 16):
            tile_n, N_pad = _choose_tile(N_pad, N_pad // 2, 8)

        grid = (N_pad // tile_n, L_pad // tile_l, H_pad // tile_k)

        x_p = features
        if (N_pad, H_pad) != (N, H):
            x_p = jnp.pad(x_p, ((0, N_pad - N), (0, H_pad - H)))
        if x_p.dtype != compute_dtype:
            x_p = x_p.astype(compute_dtype)
        w_p = weight
        if (H_pad, L_pad) != (H, L):
            w_p = jnp.pad(w_p, ((0, H_pad - H), (0, L_pad - L)))
        if w_p.dtype != compute_dtype:
            w_p = w_p.astype(compute_dtype)
        b_p = jnp.pad(bias, (0, L_pad - L)).reshape(1, L_pad).astype(jnp.float32)

        cost = pl.CostEstimate(
            flops=2 * N_pad * H_pad * L_pad,
            transcendentals=N_pad * L_pad,
            bytes_accessed=(int(x_p.size) * op_bytes * grid[1]    # x re-read per L tile
                            + int(w_p.size) * op_bytes * grid[0]  # w re-read per row tile
                            + int(b_p.size) * 4 * grid[0] * grid[1]
                            + N_pad * L_pad * out_bytes),
        )

        out_p = pl.pallas_call(
            _mlp_kernel_tiled,
            out_shape=jax.ShapeDtypeStruct((N_pad, L_pad), out_dtype),
            grid_spec=pltpu.PrefetchScalarGridSpec(
                num_scalar_prefetch=0,
                grid=grid,
                in_specs=[
                    pl.BlockSpec((tile_n, tile_k), lambda i, j, k: (i, k)),  # x
                    pl.BlockSpec((tile_k, tile_l), lambda i, j, k: (k, j)),  # weight
                    pl.BlockSpec((1, tile_l), lambda i, j, k: (0, j)),       # bias
                ],
                out_specs=pl.BlockSpec((tile_n, tile_l), lambda i, j, k: (i, j)),
                scratch_shapes=[pltpu.VMEM((tile_n, tile_l), jnp.float32)],
            ),
            compiler_params=pltpu.CompilerParams(
                dimension_semantics=("parallel", "parallel", "arbitrary"),
                vmem_limit_bytes=vmem_limit,
            ),
            cost_estimate=cost,
        )(x_p, w_p, b_p)

    if (N_pad, L_pad) != (N, L):
        out_p = out_p[:N, :L]
    return out_p


if __name__ == "__main__":
    key = jax.random.PRNGKey(0)
    k_x, k_w, k_b, k_x2, k_w2, k_b2 = jax.random.split(key, 6)

    # ---- config.hidden_size = 32, config.latent_dim = 16; batch of 8 CLS vectors ----
    hidden_size, latent_dim, batch = 32, 16, 8
    features = jax.random.normal(k_x, (batch, hidden_size), dtype=jnp.float32)
    # nn.Linear holds W: [latent, hidden]; we pass its transpose [hidden, latent].
    weight_t = jax.random.normal(k_w, (hidden_size, latent_dim), dtype=jnp.float32) * 0.1
    bias = jax.random.normal(k_b, (latent_dim,), dtype=jnp.float32) * 0.1
    ref = jnp.tanh(features @ weight_t + bias)

    # default bf16-operand path (resident-weight single-pass kernel)
    out_bf16 = jax.block_until_ready(mlp_layer(features, weight_t, bias))
    assert out_bf16.shape == (batch, latent_dim)
    assert jnp.allclose(out_bf16, ref, atol=2e-2, rtol=2e-2)

    # strict f32-operand path
    out_f32 = jax.block_until_ready(
        mlp_layer(features, weight_t, bias, compute_dtype=jnp.float32))
    assert out_f32.shape == (batch, latent_dim)
    assert jnp.allclose(out_f32, ref, atol=1e-5, rtol=1e-5)

    # ---- exercise the general tiled (K-reduction) path with non-aligned shapes ----
    N2, H2, L2 = 40, 200, 130
    features2 = jax.random.normal(k_x2, (N2, H2), dtype=jnp.float32)
    weight2 = jax.random.normal(k_w2, (H2, L2), dtype=jnp.float32) * 0.05
    bias2 = jax.random.normal(k_b2, (L2,), dtype=jnp.float32) * 0.05
    ref2 = jnp.tanh(features2 @ weight2 + bias2)

    out2 = jax.block_until_ready(
        mlp_layer(features2, weight2, bias2,
                  compute_dtype=jnp.float32,
                  tile_n=16, tile_l=128, tile_k=128,
                  resident_max_bytes=0))  # force the tiled/accumulator path
    assert out2.shape == (N2, L2)
    assert jnp.allclose(out2, ref2, atol=1e-5, rtol=1e-5)

    out2_bf16 = jax.block_until_ready(
        mlp_layer(features2, weight2, bias2,
                  tile_n=16, tile_l=128, tile_k=128,
                  resident_max_bytes=0))
    assert jnp.allclose(out2_bf16, ref2, atol=2e-2, rtol=2e-2)

    print("KERNEL_OK")
</pallas_src>

<mosaic_0001>
module attributes {stable_mosaic.version = 11 : i64} {
  func.func @_mlp_kernel_resident(%arg0: i32, %arg1: memref<8x128xbf16, #tpu.memory_space<vmem>>, %arg2: memref<128x128xbf16, #tpu.memory_space<vmem>>, %arg3: memref<1x128xf32, #tpu.memory_space<vmem>>, %arg4: memref<8x128xf32, #tpu.memory_space<vmem>>) attributes {dimension_semantics = [#tpu.dimension_semantics<parallel>], iteration_bounds = array<i64: 1>, scalar_prefetch = 0 : i64, scratch_operands = 0 : i64, tpu.core_type = #tpu.core_type<tc>, window_params = [{transform_indices = @transform_0, window_bounds = array<i64: 8, 128>}, {pipeline_mode = #tpu.pipeline_mode<synchronous>, transform_indices = @transform_1, window_bounds = array<i64: 128, 128>}, {pipeline_mode = #tpu.pipeline_mode<synchronous>, transform_indices = @transform_2, window_bounds = array<i64: 1, 128>}, {transform_indices = @transform_3, window_bounds = array<i64: 8, 128>}]} {
    %c0 = arith.constant 0 : index
    %c0_0 = arith.constant 0 : index
    %0 = vector.load %arg1[%c0, %c0_0] : memref<8x128xbf16, #tpu.memory_space<vmem>>, vector<8x128xbf16>
    %c0_1 = arith.constant 0 : index
    %c0_2 = arith.constant 0 : index
    %1 = vector.load %arg2[%c0_1, %c0_2] : memref<128x128xbf16, #tpu.memory_space<vmem>>, vector<128x128xbf16>
    %cst = arith.constant dense<0.000000e+00> : vector<8x128xf32>
    %2 = tpu.matmul %0, %1, %cst {dimension_numbers = #tpu.dot_dimension_numbers<[1], [0], [0], [1], [0, 0, 1, 1], [], []>} : vector<8x128xbf16>, vector<128x128xbf16>, vector<8x128xf32> -> vector<8x128xf32>
    %c0_3 = arith.constant 0 : index
    %c0_4 = arith.constant 0 : index
    %3 = vector.load %arg3[%c0_3, %c0_4] : memref<1x128xf32, #tpu.memory_space<vmem>>, vector<1x128xf32>
    %4 = vector.broadcast %3 : vector<1x128xf32> to vector<8x128xf32>
    %5 = arith.addf %2, %4 : vector<8x128xf32>
    %6 = math.tanh %5 : vector<8x128xf32>
    %c0_5 = arith.constant 0 : index
    %c0_6 = arith.constant 0 : index
    %7 = vector.load %arg4[%c0_5, %c0_6] : memref<8x128xf32, #tpu.memory_space<vmem>>, vector<8x128xf32>
    tpu.vector_store %arg4[%c0_5, %c0_6], %6 {strides = array<i32>} : memref<8x128xf32, #tpu.memory_space<vmem>>, vector<8x128xf32>,
    return
  }
  func.func @transform_0(%arg0: i32) -> (i32, i32) {
    %c0_i32 = arith.constant 0 : i32
    %c0_i32_0 = arith.constant 0 : i32
    return %arg0, %c0_i32 : i32, i32
  }
  func.func @transform_1(%arg0: i32) -> (i32, i32) {
    %c0_i32 = arith.constant 0 : i32
    %c0_i32_0 = arith.constant 0 : i32
    %c0_i32_1 = arith.constant 0 : i32
    return %c0_i32, %c0_i32_0 : i32, i32
  }
  func.func @transform_2(%arg0: i32) -> (i32, i32) {
    %c0_i32 = arith.constant 0 : i32
    %c0_i32_0 = arith.constant 0 : i32
    %c0_i32_1 = arith.constant 0 : i32
    return %c0_i32, %c0_i32_0 : i32, i32
  }
  func.func @transform_3(%arg0: i32) -> (i32, i32) {
    %c0_i32 = arith.constant 0 : i32
    %c0_i32_0 = arith.constant 0 : i32
    return %arg0, %c0_i32 : i32, i32
  }
}

</mosaic_0001>

<bundles_post_ra>
// kernel: tpu_custom_call.1
= control target key start
LH: loop header
LB: loop body
LE: loop exit
PB: predicated region body
PF: predicated region fallthrough
CT: control target
= control target key end

     0   :  { %8 = vsyncpa [#allocation3], 0  ;;  %s409_s0 = inlined_call_operand.hbm [shape: bf16[8,128], index: 0, kind: input, shape index: {}]   ;;  %s410_s1 = inlined_call_operand.hbm [shape: bf16[128,128], index: 1, kind: input, shape index: {}]   ;;  %s411_s2 = inlined_call_operand.hbm [shape: f32[1,128], index: 2, kind: input, shape index: {}]   ;;  %s412_s3 = inlined_call_operand.hbm [shape: f32[8,128], index: 3, kind: output, shape index: {}]  }
   0x1   :  { %9 = vsyncpa [#allocation6], 0 }
   0x2   :  { %10 = vsyncpa [#allocation4], 0  ;;  %s333_s12 = smov [#allocation5]   ;;  %s239_s16 = scalar_lea.hbm %s410_s1, 1024 }
   0x3   :  { %s26_s13 = sshll.u32 %s333_s12, 4  ;;  %p240_p0 = scmp.ne.s32.totalorder %s410_s1, %s239_s16  ;;  %s27_s13 = int_to_ptr.vmem [resolvable:$true] %s26_s13 }
   0x4   :  { %p243_p1 = scmp.lt.u32.totalorder %s239_s16, %s410_s1 }
   0x6   :  { %p245_p2 = pnand %p243_p1, %p240_p0 }
   0x8   :  { %248 = shalt.err (!%p245_p2)
}
   0x9   :  { %s249_s21 = scalar_lea.vmem %s27_s13, 1024  ;;  %p254_p4 = scmp.lt.s32.totalorder %s27_s13, %s27_s13 }
   0xa   :  { %p250_p3 = scmp.ne.s32.totalorder %s27_s13, %s249_s21  ;;  %p255_p5 = scmp.lt.s32.totalorder %s249_s21, %s249_s21 }
   0xc   :  { %p256_p6 = por %p255_p5, %p254_p4 }
   0xe   :  { %p257_p7 = pnand %p256_p6, %p250_p3 }
  0x10   :  { %260 = shalt.err (!%p257_p7)
}
  0x11   :  { %s334_s22 = smov 64   ;;  %s335_s23 = smov 4  }
  0x12   :  { %32 = dma.hbm_to_vmem [thread:$0]  %s410_s1, 1024, %s27_s13, [#allocation6], %s334_s22, %s334_s22, %s335_s23  }
  0x13   :  { %s336_s26 = smov [#allocation2]   ;;  %s337_s28 = smov [#allocation7]  }
  0x14   :  { %s17_s27 = sshll.u32 %s336_s26, 4  ;;  %s39_s29 = sshll.u32 %s337_s28, 4  ;;  %s18_s27 = int_to_ptr.vmem [resolvable:$true] %s17_s27  ;;  %s40_s29 = int_to_ptr.vmem [resolvable:$true] %s39_s29 }
  0x15   :  { %s261_s5 = scalar_lea.hbm %s409_s0, 64 }
  0x16   :  { %p262_p8 = scmp.ne.s32.totalorder %s409_s0, %s261_s5  ;;  %p265_p9 = scmp.lt.u32.totalorder %s261_s5, %s409_s0 }
  0x18   :  { %p267_p10 = pnand %p265_p9, %p262_p8 }
  0x1a   :  { %270 = shalt.err (!%p267_p10)
}
  0x1b   :  { %s271_s1 = scalar_lea.vmem %s18_s27, 64  ;;  %p276_p12 = scmp.lt.s32.totalorder %s18_s27, %s18_s27 }
  0x1c   :  { %p272_p11 = scmp.ne.s32.totalorder %s18_s27, %s271_s1  ;;  %p277_p13 = scmp.lt.s32.totalorder %s271_s1, %s271_s1 }
  0x1e   :  { %p278_p0 = por %p277_p13, %p276_p12 }
  0x20   :  { %p279_p1 = pnand %p278_p0, %p272_p11 }
  0x22   :  { %282 = shalt.err (!%p279_p1)
}
  0x23   :  { %20 = dma.hbm_to_vmem [thread:$0]  %s409_s0, 64, %s18_s27, [#allocation3]  }
  0x24   :  { %s283_s14 = scalar_lea.hbm %s411_s2, 16 }
  0x25   :  { %p284_p2 = scmp.ne.s32.totalorder %s411_s2, %s283_s14  ;;  %p287_p3 = scmp.lt.u32.totalorder %s283_s14, %s411_s2 }
  0x27   :  { %p289_p4 = pnand %p287_p3, %p284_p2 }
  0x29   :  { %292 = shalt.err (!%p289_p4)
}
  0x2a   :  { %s293_s19 = scalar_lea.vmem %s40_s29, 16  ;;  %s297_s20 = scalar_lea.vmem %s40_s29, 32 }
  0x2b   :  { %p294_p5 = scmp.ne.s32.totalorder %s40_s29, %s293_s19  ;;  %p298_p6 = scmp.lt.s32.totalorder %s40_s29, %s40_s29 }
  0x2c   :  { %p299_p7 = scmp.lt.s32.totalorder %s297_s20, %s293_s19 }
  0x2e   :  { %p300_p8 = por %p299_p7, %p298_p6 }
  0x30   :  { %p301_p9 = pnand %p300_p8, %p294_p5 }
  0x32   :  { %304 = shalt.err (!%p301_p9)
}
  0x33   :  { %42 = dma.hbm_to_vmem [thread:$0]  %s411_s2, 16, %s40_s29, [#allocation6]  }
  0x34   :  { %327 = dma.done.wait [#allocation3], 64  }
  0x35   :  { %328 = vsyncadd [#allocation3], 4294967232 }
  0x36   :  { %329 = dma.done.wait [#allocation6], 1040  }
  0x37   :  { %330 = vsyncadd [#allocation6], 4294966256  ;;  %v338_v0 = vmov 0.0   ;;  %vm339_vm0 = vmmov 0   ;;  %v229_v1 = vld [vmem:[#allocation5] sm:$0xff]   ;;  %v230_v2 = vld [vmem:[#allocation5 + $0x8] sm:$0xff]  }
  0x38   :  { %201 = vmatprep.subr.bf16.mxu0 %v338_v0  ;;  %217 = vmatprep.mubr.msk.bf16.mxu0 %vm339_vm0, %v338_v0  ;;  %v231_v3 = vld [vmem:[#allocation5 + $0x10] sm:$0xff]   ;;  %v232_v4 = vld [vmem:[#allocation5 + $0x18] sm:$0xff]   ;;  %v233_v5 = vld [vmem:[#allocation5 + $0x20] sm:$0xff]   ;;  %s340_s2 = smov [#allocation8]  }
  0x39   :  { %202 = vmatpush3.bf16.msra.mxu0 %v229_v1  ;;  %v234_v6 = vld [vmem:[#allocation5 + $0x28] sm:$0xff]   ;;  %v235_v7 = vld [vmem:[#allocation5 + $0x30] sm:$0xff]   ;;  %v236_v8 = vld [vmem:[#allocation5 + $0x38] sm:$0xff]   ;;  %s173_s22 = sshll.u32 %s340_s2, 4  ;;  %s174_s22 = int_to_ptr.vmem [resolvable:$true] %s173_s22 }
  0x3a   :  { %203 = vmatprep.subr.bf16.mxu0 %v338_v0  ;;  %v53_v9 = vld [vmem:[#allocation2] sm:$0xf]  ;;  %v183_v10 = vld [vmem:[#allocation7] ss:$0 sm:$0xff]  ;;  %s305_s23 = scalar_lea.vmem %s174_s22, 128  ;;  %p310_p11 = scmp.lt.s32.totalorder %s174_s22, %s174_s22 }
  0x3b   :  { %p306_p10 = scmp.ne.s32.totalorder %s174_s22, %s305_s23  ;;  %p311_p12 = scmp.lt.s32.totalorder %s305_s23, %s305_s23 }
  0x3d   :  { %204 = vmatpush3.bf16.msra.mxu0 %v230_v2  ;;  %p312_p13 = por %p311_p12, %p310_p11 }
  0x3e   :  { %205 = vmatprep.subr.bf16.mxu0 %v338_v0 }
  0x3f   :  { %p313_p0 = pnand %p312_p13, %p306_p10 }
  0x41   :  { %206 = vmatpush3.bf16.msra.mxu0 %v231_v3 }
  0x42   :  { %207 = vmatprep.subr.bf16.mxu0 %v338_v0 }
  0x45   :  { %208 = vmatpush3.bf16.msra.mxu0 %v232_v4 }
  0x46   :  { %209 = vmatprep.subr.bf16.mxu0 %v338_v0 }
  0x49   :  { %210 = vmatpush3.bf16.msra.mxu0 %v233_v5 }
  0x4a   :  { %211 = vmatprep.subr.bf16.mxu0 %v338_v0 }
  0x4d   :  { %212 = vmatpush3.bf16.msra.mxu0 %v234_v6 }
  0x4e   :  { %213 = vmatprep.subr.bf16.mxu0 %v338_v0 }
  0x51   :  { %214 = vmatpush3.bf16.msra.mxu0 %v235_v7 }
  0x52   :  { %215 = vmatprep.subr.bf16.mxu0 %v338_v0 }
  0x55   :  { %216 = vmatpush3.bf16.msra.mxu0 %v236_v8 }
  0x58   :  { %218 = vmatmul.mubr.bf16.vlgmr.msra.gmra.mrb[0].mxu0 %v53_v9 }
 0x12b   :  { %v159_v11 = vpop.f32.mrb[0].mxu0 }
 0x12c   :  { %v160_v12 = vadd.f32 %v183_v10, %v159_v11  ;;  %v219_v13 = vpop.f32.mrb[1].mxu0 }
 0x12d   :  { %v162_v14 = vpop.f32.mrb[2].mxu0 }
 0x12e   :  { %237 = vtanh.f32 %v160_v12  ;;  %v220_v15 = vpop.f32.mrb[3].mxu0 }
 0x138   :  { %v238_v16 = vpop.eup %237 }
 0x139   :  { %166 = vst [vmem:[#allocation8] sm:$0xff] %v238_v16 }
 0x13a   :  { %316 = shalt.err (!%p313_p0)
}
 0x13b   :  { %s317_s26 = scalar_lea.hbm %s412_s3, 128 }
 0x13c   :  { %p318_p1 = scmp.ne.s32.totalorder %s412_s3, %s317_s26  ;;  %p321_p2 = scmp.lt.u32.totalorder %s317_s26, %s412_s3 }
 0x13e   :  { %p323_p3 = pnand %p321_p2, %p318_p1 }
 0x140   :  { %326 = shalt.err (!%p323_p3)
}
 0x141   :  { %176 = dma.vmem_to_hbm [thread:$0]  %s174_s22, 128, %s412_s3, [#allocation4]  }
 0x142   :  { %331 = dma.done.wait [#allocation4], 128  }
 0x143   :  { %332 = vsyncadd [#allocation4], 4294967168 }
 0x144   :  { %180 = vsyncpa [#allocation3], 1 }
 0x145   :  { %181 = vsyncpa [#allocation6], 1 }
 0x146   :  { %182 = vsyncpa [#allocation4], 1 }

</bundles_post_ra>
